<compile_context>
chip_gen: v7x
topology: tpu7x:2x2x1
jax: 0.10.0
libtpu: 0.0.40
codegen_flags: <defaults>
</compile_context>

<pallas_src>
import functools
import math

import jax
import jax.numpy as jnp
from jax.experimental import pallas as pl
from jax.experimental.pallas import tpu as pltpu


# ------------------------------- kernels -------------------------------------

def _sigmoid_direct_kernel(x_ref, s_ref, y_ref, ld_ref):
    """y = sigmoid(x); per-original-row logdet via segmented-sum matmul."""
    x = x_ref[...].astype(jnp.float32)

    pos = x >= 0.0
    neg_abs = jnp.where(pos, -x, x)              # -|x|
    ex = jnp.exp(neg_abs)                        # exp(-|x|) in (0, 1]
    inv = pl.reciprocal(1.0 + ex)                # exact: tolerance-critical
    y = jnp.where(pos, inv, ex * inv)            # stable sigmoid, one divide

    # -x - 2*softplus(-x)  ==  -|x| - 2*log1p(exp(-|x|))
    ld_elem = neg_abs - 2.0 * jnp.log1p(ex)

    y_ref[...] = y.astype(y_ref.dtype)
    # s_ref is a constant (fold*d, fold) 0/1 selection matrix (hoisted out of
    # the kernel); the reduction rides on the otherwise idle MXU.
    ld_ref[...] = jnp.dot(ld_elem, s_ref[...],
                          preferred_element_type=jnp.float32).astype(ld_ref.dtype)


def _sigmoid_inverse_kernel(x_ref, s_ref, y_ref, ld_ref):
    """y = logit(x); per-original-row logdet via segmented-sum matmul."""
    x = x_ref[...].astype(jnp.float32)
    log_x = jnp.log(x)
    log_1mx = jnp.log1p(-x)                      # stable log(1 - x)

    y_ref[...] = (log_x - log_1mx).astype(y_ref.dtype)
    ld_ref[...] = jnp.dot(-log_x - log_1mx, s_ref[...],
                          preferred_element_type=jnp.float32).astype(ld_ref.dtype)


# ------------------------------ tiling helpers --------------------------------

def _chip_info():
    """(num_tensorcores_per_chip, target_input_tile_bytes)."""
    kind = ""
    try:
        kind = jax.devices()[0].device_kind.lower()
    except Exception:
        pass
    is_v7 = "v7" in kind
    num_cores = 2 if is_v7 else 1                # only v7x has 2 TCs per chip
    target_bytes = (4 << 20) if is_v7 else (2 << 20)
    return num_cores, target_bytes


def _pick_block_rows(num_rows, row_bytes, *, target_bytes, num_cores,
                     vmem_budget=24 << 20):
    """Rows per tile: ~target_bytes input tiles, VMEM-capped, TC-aware."""
    rows = max(1, target_bytes // max(1, row_bytes))
    # Cap so double-buffered (input + output) tiles stay inside the budget.
    rows = min(rows, max(1, vmem_budget // max(1, 4 * row_bytes)))
    rows = min(rows, num_rows)

    if rows >= num_rows:
        if num_cores > 1 and num_rows >= 16:
            # 2 TensorCores: split into two near-equal tiles so both get work.
            rows = min(num_rows, ((-(-num_rows // 2) + 7) // 8) * 8)
        else:
            # Single TC: one tile, no extra grid-step overhead.
            rows = num_rows
    else:
        rows = max(8, (rows // 8) * 8)           # (8, 128) block-shape rule
    return rows


# --------------------------------- wrapper ------------------------------------

def sigmoid_flow(inputs, cond_inputs=None, mode='direct'):
    """Pallas equivalent of Sigmoid.forward (sum/keepdim over the last dim)."""
    del cond_inputs  # unused by the reference module

    orig_shape = inputs.shape
    d = orig_shape[-1]
    x2 = inputs.reshape(-1, d)
    b = x2.shape[0]

    # Fold rows into lanes so the elementwise output's last dim is a multiple
    # of 128 (unmasked vector stores).  Pad the batch (value 0.5 -> finite in
    # both modes) instead of falling back to a lane-sparse layout.
    fold = 1 if d % 128 == 0 else 128 // math.gcd(d, 128)
    pad = (-b) % fold
    if pad:
        x2 = jnp.pad(x2, ((0, pad), (0, 0)), constant_values=0.5)
    bp = b + pad
    bf, df = bp // fold, fold * d
    xf = x2.reshape(bf, df)

    # Constant segmented-sum selection matrix, built once (hoisted from kernel).
    seg_of_lane = (jnp.arange(df, dtype=jnp.int32) // d)[:, None]
    sel = (seg_of_lane == jnp.arange(fold, dtype=jnp.int32)[None, :]
           ).astype(jnp.float32)

    num_cores, target_bytes = _chip_info()
    block_rows = _pick_block_rows(bf, df * x2.dtype.itemsize,
                                  target_bytes=target_bytes,
                                  num_cores=num_cores)
    grid = (pl.cdiv(bf, block_rows),)

    kernel = _sigmoid_direct_kernel if mode == 'direct' else _sigmoid_inverse_kernel

    y_f, ld_f = pl.pallas_call(
        kernel,
        out_shape=(
            jax.ShapeDtypeStruct((bf, df), inputs.dtype),
            jax.ShapeDtypeStruct((bf, fold), inputs.dtype),
        ),
        grid_spec=pl.GridSpec(
            grid=grid,
            in_specs=[
                pl.BlockSpec((block_rows, df), lambda i: (i, 0)),
                pl.BlockSpec((df, fold), lambda i: (0, 0)),   # constant block
            ],
            out_specs=(
                pl.BlockSpec((block_rows, df), lambda i: (i, 0)),
                pl.BlockSpec((block_rows, fold), lambda i: (i, 0)),
            ),
        ),
        compiler_params=pltpu.CompilerParams(
            dimension_semantics=("parallel",),
            vmem_limit_bytes=32 << 20,
        ),
    )(xf, sel)

    y = y_f.reshape(bp, d)[:b].reshape(orig_shape)
    logdet = ld_f.reshape(bp, 1)[:b].reshape(orig_shape[:-1] + (1,))
    return y, logdet


# --------------------------- reference (pure JAX) ------------------------------

def _ref_direct(x):
    y = jax.nn.sigmoid(x)
    logdet = -x - 2.0 * jax.nn.softplus(-x)
    return y, jnp.sum(logdet, axis=-1, keepdims=True)


def _ref_inverse(x):
    y = jnp.log(x) - jnp.log(1.0 - x)
    logdet = -jnp.log(x) - jnp.log(1.0 - x)
    return y, jnp.sum(logdet, axis=-1, keepdims=True)


# ----------------------------------- main --------------------------------------

if __name__ == "__main__":
    key = jax.random.PRNGKey(0)
    B, D = 8, 32                                  # batch=8, hidden=32
    x = jax.random.normal(key, (B, D), dtype=jnp.float32) * 2.0

    # direct mode (row-folded lane-dense layout: (8, 32) -> (2, 128))
    y, logdet = sigmoid_flow(x, mode='direct')
    jax.block_until_ready((y, logdet))
    y_ref, logdet_ref = _ref_direct(x)
    assert jnp.allclose(y, y_ref, atol=1e-5, rtol=1e-5)
    assert jnp.allclose(logdet, logdet_ref, atol=1e-4, rtol=1e-5)

    # inverse mode (inputs must lie in (0, 1) — use the direct-mode output)
    z, logdet_inv = sigmoid_flow(y, mode='inverse')
    jax.block_until_ready((z, logdet_inv))
    z_ref, logdet_inv_ref = _ref_inverse(y)
    assert jnp.allclose(z, z_ref, atol=1e-4, rtol=1e-5)
    assert jnp.allclose(logdet_inv, logdet_inv_ref, atol=1e-3, rtol=1e-5)

    # batch that needs row padding before folding (10 % 4 != 0)
    x_odd = jax.random.normal(jax.random.PRNGKey(1), (10, 32), dtype=jnp.float32)
    y_odd, ld_odd = sigmoid_flow(x_odd, mode='direct')
    jax.block_until_ready((y_odd, ld_odd))
    y_odd_ref, ld_odd_ref = _ref_direct(x_odd)
    assert jnp.allclose(y_odd, y_odd_ref, atol=1e-5, rtol=1e-5)
    assert jnp.allclose(ld_odd, ld_odd_ref, atol=1e-4, rtol=1e-5)

    # inverse mode on a padded-batch shape (checks the 0.5 pad value is safe)
    z_odd, ld_odd_inv = sigmoid_flow(y_odd, mode='inverse')
    jax.block_until_ready((z_odd, ld_odd_inv))
    z_odd_ref, ld_odd_inv_ref = _ref_inverse(y_odd)
    assert jnp.allclose(z_odd, z_odd_ref, atol=1e-4, rtol=1e-5)
    assert jnp.allclose(ld_odd_inv, ld_odd_inv_ref, atol=1e-3, rtol=1e-5)

    # 3-D input with a prime-ish feature dim (fold=128, heavy padding path)
    x3 = jax.random.normal(jax.random.PRNGKey(2), (2, 5, 7), dtype=jnp.float32)
    y3, ld3 = sigmoid_flow(x3, mode='direct')
    jax.block_until_ready((y3, ld3))
    y3_ref, ld3_ref = _ref_direct(x3)
    assert jnp.allclose(y3, y3_ref, atol=1e-5, rtol=1e-5)
    assert jnp.allclose(ld3, ld3_ref, atol=1e-4, rtol=1e-5)

    print("KERNEL_OK")
</pallas_src>

<mosaic_0001>
module attributes {stable_mosaic.version = 11 : i64} {
  func.func @_sigmoid_direct_kernel(%arg0: i32, %arg1: memref<2x128xf32, #tpu.memory_space<vmem>>, %arg2: memref<128x4xf32, #tpu.memory_space<vmem>>, %arg3: memref<2x128xf32, #tpu.memory_space<vmem>>, %arg4: memref<2x4xf32, #tpu.memory_space<vmem>>) attributes {dimension_semantics = [#tpu.dimension_semantics<parallel>], iteration_bounds = array<i64: 1>, scalar_prefetch = 0 : i64, scratch_operands = 0 : i64, tpu.core_type = #tpu.core_type<tc>, window_params = [{transform_indices = @transform_0, window_bounds = array<i64: 2, 128>}, {pipeline_mode = #tpu.pipeline_mode<synchronous>, transform_indices = @transform_1, window_bounds = array<i64: 128, 4>}, {transform_indices = @transform_2, window_bounds = array<i64: 2, 128>}, {transform_indices = @transform_3, window_bounds = array<i64: 2, 4>}]} {
    %c0 = arith.constant 0 : index
    %c0_0 = arith.constant 0 : index
    %0 = vector.load %arg1[%c0, %c0_0] : memref<2x128xf32, #tpu.memory_space<vmem>>, vector<2x128xf32>
    %cst = arith.constant 0.000000e+00 : f32
    %1 = vector.broadcast %cst : f32 to vector<2x128xf32>
    %2 = arith.cmpf oge, %0, %1 : vector<2x128xf32>
    %cst_1 = arith.constant 0.000000e+00 : f32
    %3 = vector.broadcast %cst_1 : f32 to vector<2x128xf32>
    %4 = arith.subf %3, %0 : vector<2x128xf32>
    %5 = arith.select %2, %4, %0 : vector<2x128xi1>, vector<2x128xf32>
    %6 = math.exp %5 : vector<2x128xf32>
    %cst_2 = arith.constant 1.000000e+00 : f32
    %7 = vector.broadcast %cst_2 : f32 to vector<2x128xf32>
    %8 = arith.addf %7, %6 : vector<2x128xf32>
    %9 = tpu.reciprocal %8 : vector<2x128xf32> -> vector<2x128xf32>
    %10 = arith.mulf %6, %9 : vector<2x128xf32>
    %11 = arith.select %2, %9, %10 : vector<2x128xi1>, vector<2x128xf32>
    %12 = math.log1p %6 : vector<2x128xf32>
    %cst_3 = arith.constant 2.000000e+00 : f32
    %13 = vector.broadcast %cst_3 : f32 to vector<2x128xf32>
    %14 = arith.mulf %13, %12 : vector<2x128xf32>
    %15 = arith.subf %5, %14 : vector<2x128xf32>
    %c0_4 = arith.constant 0 : index
    %c0_5 = arith.constant 0 : index
    %16 = vector.load %arg3[%c0_4, %c0_5] : memref<2x128xf32, #tpu.memory_space<vmem>>, vector<2x128xf32>
    tpu.vector_store %arg3[%c0_4, %c0_5], %11 {strides = array<i32>} : memref<2x128xf32, #tpu.memory_space<vmem>>, vector<2x128xf32>,
    %c0_6 = arith.constant 0 : index
    %c0_7 = arith.constant 0 : index
    %17 = vector.load %arg2[%c0_6, %c0_7] : memref<128x4xf32, #tpu.memory_space<vmem>>, vector<128x4xf32>
    %cst_8 = arith.constant dense<0.000000e+00> : vector<2x4xf32>
    %18 = tpu.matmul %15, %17, %cst_8 {dimension_numbers = #tpu.dot_dimension_numbers<[1], [0], [0], [1], [0, 0, 1, 1], [], []>} : vector<2x128xf32>, vector<128x4xf32>, vector<2x4xf32> -> vector<2x4xf32>
    %c0_9 = arith.constant 0 : index
    %c0_10 = arith.constant 0 : index
    %19 = vector.load %arg4[%c0_9, %c0_10] : memref<2x4xf32, #tpu.memory_space<vmem>>, vector<2x4xf32>
    tpu.vector_store %arg4[%c0_9, %c0_10], %18 {strides = array<i32>} : memref<2x4xf32, #tpu.memory_space<vmem>>, vector<2x4xf32>,
    return
  }
  func.func @transform_0(%arg0: i32) -> (i32, i32) {
    %c0_i32 = arith.constant 0 : i32
    %c0_i32_0 = arith.constant 0 : i32
    return %arg0, %c0_i32 : i32, i32
  }
  func.func @transform_1(%arg0: i32) -> (i32, i32) {
    %c0_i32 = arith.constant 0 : i32
    %c0_i32_0 = arith.constant 0 : i32
    %c0_i32_1 = arith.constant 0 : i32
    return %c0_i32, %c0_i32_0 : i32, i32
  }
  func.func @transform_2(%arg0: i32) -> (i32, i32) {
    %c0_i32 = arith.constant 0 : i32
    %c0_i32_0 = arith.constant 0 : i32
    return %arg0, %c0_i32 : i32, i32
  }
  func.func @transform_3(%arg0: i32) -> (i32, i32) {
    %c0_i32 = arith.constant 0 : i32
    %c0_i32_0 = arith.constant 0 : i32
    return %arg0, %c0_i32 : i32, i32
  }
}

</mosaic_0001>

<bundles_post_ra>
// kernel: tpu_custom_call.1
= control target key start
LH: loop header
LB: loop body
LE: loop exit
PB: predicated region body
PF: predicated region fallthrough
CT: control target
= control target key end

     0   :  { %9 = vsyncpa [#allocation3], 0  ;;  %v288_v3 = vmov 0.0|0.0   ;;  %vm289_vm0 = vmmov 0   ;;  %v290_v6 = vmov 0.0   ;;  %s390_s0 = inlined_call_operand.vmem [shape: f32[2,128], index: 0, kind: input, shape index: {}]   ;;  %s391_s1 = inlined_call_operand.vmem [shape: f32[128,4], index: 1, kind: input, shape index: {}]   ;;  %s392_s2 = inlined_call_operand.hbm [shape: f32[2,128], index: 2, kind: output, shape index: {0}]   ;;  %s393_s3 = inlined_call_operand.hbm [shape: f32[2,4], index: 3, kind: output, shape index: {1}]  }
   0x1   :  { %v37_v0 = vld [vmem:[%s391_s1] sm:$0xff]  ;;  %v38_v1 = vld [vmem:[%s391_s1 + $0x8] sm:$0xff]  ;;  %v39_v2 = vld [vmem:[%s391_s1 + $0x10] sm:$0xff]  ;;  %205 = vmatprep.subr.bf16.mxu0 %v288_v3  ;;  %202 = vmatprep.mubr.msk.f32.mxu0 %vm289_vm0, %v290_v6 }
   0x2   :  { %v206_v4 = vpack.c.bf16 %v38_v1, %v37_v0  ;;  %v40_v5 = vld [vmem:[%s391_s1 + $0x18] sm:$0xff]  ;;  %v41_v8 = vld [vmem:[%s391_s1 + $0x20] sm:$0xff]  ;;  %v42_v9 = vld [vmem:[%s391_s1 + $0x28] sm:$0xff] }
   0x3   :  { %v209_v7 = vpack.c.bf16 %v40_v5, %v39_v2  ;;  %v15_v10 = vld [vmem:[%s390_s0] sm:$0x3] }
   0x4   :  { %207 = vmatpush3.bf16.msra.mxu0 %v206_v4 }
   0x5   :  { %208 = vmatprep.subr.bf16.mxu0 %v288_v3 }
   0x6   :  { %10 = vsyncpa [#allocation5], 0  ;;  %vm16_vm1 = vcmp.ge.f32.partialorder %v15_v10, 0.0  ;;  %v17_v11 = vsub.f32 0.0, %v15_v10  ;;  %v212_v12 = vpack.c.bf16 %v42_v9, %v41_v8  ;;  %v43_v13 = vld [vmem:[%s391_s1 + $0x30] sm:$0xff]  ;;  %v44_v14 = vld [vmem:[%s391_s1 + $0x38] sm:$0xff] }
   0x7   :  { %v215_v17 = vpack.c.bf16 %v44_v14, %v43_v13  ;;  %v45_v18 = vld [vmem:[%s391_s1 + $0x40] sm:$0xff]  ;;  %v46_v19 = vld [vmem:[%s391_s1 + $0x48] sm:$0xff]  ;;  %v47_v21 = vld [vmem:[%s391_s1 + $0x50] sm:$0xff] }
   0x8   :  { %210 = vmatpush3.bf16.msra.mxu0 %v209_v7  ;;  %v18_v15 = vsel %vm16_vm1, %v17_v11, %v15_v10  ;;  %v218_v20 = vpack.c.bf16 %v46_v19, %v45_v18  ;;  %v48_v22 = vld [vmem:[%s391_s1 + $0x58] sm:$0xff]  ;;  %v49_v24 = vld [vmem:[%s391_s1 + $0x60] sm:$0xff]  ;;  %v50_v25 = vld [vmem:[%s391_s1 + $0x68] sm:$0xff] }
   0x9   :  { %211 = vmatprep.subr.bf16.mxu0 %v288_v3  ;;  %v19_v16 = vmul.f32 1.442695, %v18_v15  ;;  %v221_v23 = vpack.c.bf16 %v48_v22, %v47_v21  ;;  %v224_v28 = vpack.c.bf16 %v50_v25, %v49_v24  ;;  %v51_v29 = vld [vmem:[%s391_s1 + $0x70] sm:$0xff]  ;;  %v52_v30 = vld [vmem:[%s391_s1 + $0x78] sm:$0xff]  ;;  %s291_s1 = smov [#allocation2]  }
   0xa   :  { %v227_v32 = vpack.c.bf16 %v52_v30, %v51_v29  ;;  %s131_s18 = sshll.u32 %s291_s1, 4  ;;  %s132_s18 = int_to_ptr.vmem [resolvable:$true] %s131_s18 }
   0xb   :  { %234 = vpow2.f32 %v19_v16  ;;  %s240_s19 = scalar_lea.vmem %s132_s18, 32  ;;  %p245_p1 = scmp.lt.s32.totalorder %s132_s18, %s132_s18 }
   0xc   :  { %213 = vmatpush3.bf16.msra.mxu0 %v212_v12  ;;  %p241_p0 = scmp.ne.s32.totalorder %s132_s18, %s240_s19  ;;  %p246_p2 = scmp.lt.s32.totalorder %s240_s19, %s240_s19 }
   0xd   :  { %214 = vmatprep.subr.bf16.mxu0 %v288_v3 }
   0xe   :  { %p247_p3 = por %p246_p2, %p245_p1 }
  0x10   :  { %216 = vmatpush3.bf16.msra.mxu0 %v215_v17  ;;  %p248_p4 = pnand %p247_p3, %p241_p0 }
  0x11   :  { %217 = vmatprep.subr.bf16.mxu0 %v288_v3 }
  0x14   :  { %219 = vmatpush3.bf16.msra.mxu0 %v218_v20 }
  0x15   :  { %220 = vmatprep.subr.bf16.mxu0 %v288_v3  ;;  %v235_v26 = vpop.eup %234 }
  0x16   :  { %v21_v27 = vadd.f32 1.0, %v235_v26  ;;  %v28_v31 = vmul.f32 -0.5, %v235_v26  ;;  %v31_v34 = vand.u32 2147483647, %v235_v26 }
  0x18   :  { %222 = vmatpush3.bf16.msra.mxu0 %v221_v23  ;;  %236 = vlog2.f32 %v21_v27  ;;  %v29_v33 = vadd.f32 1.0, %v28_v31  ;;  %vm32_vm2 = vcmp.lt.f32.partialorder %v31_v34, 0.0004427343 }
  0x19   :  { %223 = vmatprep.subr.bf16.mxu0 %v288_v3  ;;  %238 = vrcp.f32 %v21_v27 }
  0x1a   :  { %v30_v35 = vmul.f32 %v235_v26, %v29_v33 }
  0x1c   :  { %225 = vmatpush3.bf16.msra.mxu0 %v224_v28 }
  0x1d   :  { %226 = vmatprep.subr.bf16.mxu0 %v288_v3 }
  0x20   :  { %228 = vmatpush3.bf16.msra.mxu0 %v227_v32 }
  0x22   :  { %v237_v36 = vpop.eup %236 }
  0x23   :  { %v27_v37 = vmul.f32 0.6931472, %v237_v36  ;;  %v239_v41 = vpop.eup %238 }
  0x24   :  { %v23_v42 = vmul.f32 %v239_v41, %v235_v26 }
  0x25   :  { %v33_v38 = vsel %vm32_vm2, %v30_v35, %v27_v37 }
  0x26   :  { %v34_v39 = vmul.f32 2.0, %v33_v38  ;;  %v24_v43 = vsel %vm16_vm1, %v239_v41, %v23_v42 }
  0x27   :  { %36 = vst [vmem:[#allocation2] sm:$0x3] %v24_v43 }
  0x28   :  { %v35_v40 = vsub.f32 %v18_v15, %v34_v39 }
  0x2a   :  { %203 = vmatmul.mubr.f32.vlgmr.msra.gmra.mrb[0].mxu0 %v35_v40 }
  0x2b   :  { %251 = shalt.err (!%p248_p4)
}
  0x2c   :  { %s252_s22 = scalar_lea.hbm %s392_s2, 32 }
  0x2d   :  { %p253_p5 = scmp.ne.s32.totalorder %s392_s2, %s252_s22  ;;  %p256_p6 = scmp.lt.u32.totalorder %s252_s22, %s392_s2 }
  0x2f   :  { %p258_p7 = pnand %p256_p6, %p253_p5 }
  0x31   :  { %261 = shalt.err (!%p258_p7)
}
  0x32   :  { %134 = dma.vmem_to_hbm [thread:$0]  %s132_s18, 32, %s392_s2, [#allocation3]   ;;  %vm123_vm3 = vcmask 25600  }
  0x33   :  { %s292_s29 = smov [#allocation4]  }
  0x34   :  { %s141_s0 = sshll.u32 %s292_s29, 4  ;;  %s142_s0 = int_to_ptr.vmem [resolvable:$true] %s141_s0 }
  0x35   :  { %s262_s30 = scalar_lea.vmem %s142_s0, 32  ;;  %p267_p9 = scmp.lt.s32.totalorder %s142_s0, %s142_s0 }
  0x36   :  { %p263_p8 = scmp.ne.s32.totalorder %s142_s0, %s262_s30  ;;  %p268_p10 = scmp.lt.s32.totalorder %s262_s30, %s262_s30 }
  0x38   :  { %p269_p11 = por %p268_p10, %p267_p9 }
  0x3a   :  { %p270_p12 = pnand %p269_p11, %p263_p8 }
  0xfd   :  { %v119_v44 = vpop.f32.mrb[0].mxu0 }
  0xfe   :  { %124 = vst.msk [vmem:[#allocation4] sm:$0x3] %vm123_vm3, %v119_v44  ;;  %v204_v45 = vpop.f32.mrb[1].mxu0 }
  0xff   :  { %273 = shalt.err (!%p270_p12)
}
 0x100   :  { %s274_s6 = scalar_lea.hbm %s393_s3, 32 }
 0x101   :  { %p275_p13 = scmp.ne.s32.totalorder %s393_s3, %s274_s6  ;;  %p278_p0 = scmp.lt.u32.totalorder %s274_s6, %s393_s3 }
 0x103   :  { %p280_p1 = pnand %p278_p0, %p275_p13 }
 0x105   :  { %283 = shalt.err (!%p280_p1)
}
 0x106   :  { %144 = dma.vmem_to_hbm [thread:$0]  %s142_s0, 32, %s393_s3, [#allocation5]  }
 0x107   :  { %284 = dma.done.wait [#allocation3], 32  }
 0x108   :  { %285 = vsyncadd [#allocation3], 4294967264 }
 0x109   :  { %286 = dma.done.wait [#allocation5], 32  }
 0x10a   :  { %287 = vsyncadd [#allocation5], 4294967264 }
 0x10b   :  { %151 = vsyncpa [#allocation3], 1 }
 0x10c   :  { %152 = vsyncpa [#allocation5], 1 }

</bundles_post_ra>
